<compile_context>
chip_gen: v7x
topology: tpu7x:2x2x1
jax: 0.10.0
libtpu: 0.0.40
codegen_flags: <defaults>
</compile_context>

<pallas_src>
import math
import functools

import jax
import jax.numpy as jnp
from jax.experimental import pallas as pl
from jax.experimental.pallas import tpu as pltpu


def _attention_kernel(x_ref, wqkv_ref, bqkv_ref, wo_ref, bo_ref, o_ref,
                      q_hm_ref, k_hm_ref, v_hm_ref, ctx_ref, *,
                      num_heads, head_dim, compute_dtype, approx_recip):
    hd = head_dim
    x = x_ref[...]                                       # (S, H) compute_dtype

    # ---- Fused QKV projection: one MXU pass, K = H, N = 3H, f32 accum. ----
    # 1/sqrt(head_dim) is already folded into the Q columns of W_qkv/b_qkv.
    qkv = jnp.dot(x, wqkv_ref[...],
                  preferred_element_type=jnp.float32)    # (S, 3H) f32

    # ---- One-time re-layout to head-major (num_heads, S, head_dim). -------
    # Bias-add + compute_dtype cast happen per head chunk; the misaligned
    # head_dim-wide lane slices are paid once here instead of at every
    # per-head matmul use.
    for h in range(num_heads):
        for ref, t in ((q_hm_ref, 0), (k_hm_ref, 1), (v_hm_ref, 2)):
            lo = (t * num_heads + h) * hd
            ref[h] = (qkv[:, lo:lo + hd]
                      + bqkv_ref[:, lo:lo + hd]).astype(compute_dtype)

    q = q_hm_ref[...]                                    # (nh, S, hd)
    k = k_hm_ref[...]
    v = v_hm_ref[...]

    # ---- Batched attention across all heads (back-to-back MXU pushes). ----
    s = jnp.einsum("nqd,nkd->nqk", q, k,
                   preferred_element_type=jnp.float32)   # (nh, S, S) f32
    s = s - jnp.max(s, axis=-1, keepdims=True)
    p = jnp.exp(s)
    inv = pl.reciprocal(jnp.sum(p, axis=-1, keepdims=True), approx=approx_recip)
    p = (p * inv).astype(compute_dtype)
    # TODO(synk): attention-prob dropout omitted (eval-mode identity).

    ctx_hm = jnp.einsum("nqk,nkd->nqd", p, v,
                        preferred_element_type=jnp.float32)  # (nh, S, hd) f32

    # ---- Re-assemble heads into a lane-dense (S, H) slab. -----------------
    for h in range(num_heads):
        ctx_ref[:, h * hd:(h + 1) * hd] = ctx_hm[h].astype(compute_dtype)

    # ---- Output projection: single K = H matmul. ---------------------------
    out = jnp.dot(ctx_ref[...], wo_ref[...],
                  preferred_element_type=jnp.float32)
    out = out + bo_ref[...]
    o_ref[...] = out.astype(o_ref.dtype)
    # TODO(synk): projection dropout omitted (eval-mode identity).


def attention_forward(x, params, *, num_heads, compute_dtype=jnp.bfloat16,
                      out_dtype=None, approx_recip=True):
    """x: (B, S, H). params: dict with wq,bq,wk,bk,wv,bv,wo,bo.

    Weights are (in_features, out_features); biases are (1, out_features).
    `approx_recip=False` switches the softmax denominator to an exact divide
    for accuracy-sensitive deployments.
    """
    B, S, H = x.shape
    assert H % num_heads == 0
    head_dim = H // num_heads
    scale = 1.0 / math.sqrt(head_dim)
    out_dtype = x.dtype if out_dtype is None else out_dtype

    # Fold the softmax scale into the Q projection and fuse Q/K/V into one
    # (H, 3H) weight / (1, 3H) bias.
    w_qkv = jnp.concatenate(
        [params["wq"] * scale, params["wk"], params["wv"]], axis=1)
    b_qkv = jnp.concatenate(
        [params["bq"] * scale, params["bk"], params["bv"]], axis=1)

    # compute_dtype MXU operands; biases stay f32 (added to f32 accumulators).
    x_in = x.astype(compute_dtype)
    w_qkv = w_qkv.astype(compute_dtype)
    w_o = params["wo"].astype(compute_dtype)
    b_qkv = b_qkv.astype(jnp.float32)
    b_o = params["bo"].astype(jnp.float32)

    kernel = functools.partial(_attention_kernel, num_heads=num_heads,
                               head_dim=head_dim, compute_dtype=compute_dtype,
                               approx_recip=approx_recip)

    # Scoped-VMEM budget from the actual per-step footprint, capped at ~80%
    # of physical VMEM (v7x: ~51 MiB of 64 MiB; v5e/v6e: up to ~100 MiB).
    # TODO(synk): for very large S (e.g. ViT-H, S~577) on v7x, add a query-
    # tile grid axis so the f32 scores/ctx intermediates shrink per step.
    itm = jnp.dtype(compute_dtype).itemsize
    f32 = 4
    est_bytes = (
        2 * S * H * (itm + jnp.dtype(out_dtype).itemsize)   # x/out blocks (2x buffered)
        + 2 * (3 * H * H + H * H) * itm + 2 * 4 * H * f32   # weights/biases (2x buffered)
        + S * 3 * H * f32                                   # f32 fused-QKV accumulator
        + 4 * S * H * itm                                   # q/k/v head-major + ctx scratch
        + num_heads * S * S * (f32 + itm)                   # scores (f32) + probs
        + 2 * S * H * f32                                   # ctx_hm + out f32 intermediates
    )
    try:
        info = pltpu.get_tpu_info()
        vmem_cap = int(getattr(info, "vmem_capacity_bytes", 64 << 20))
    except Exception:  # conservative fallback if the query is unavailable
        vmem_cap = 64 << 20
    cap = min(int(0.8 * vmem_cap), 100 << 20)
    vmem_limit = max(32 << 20, min(int(1.5 * est_bytes), cap))

    grid_spec = pltpu.PrefetchScalarGridSpec(
        num_scalar_prefetch=0,
        grid=(B,),
        in_specs=[
            pl.BlockSpec((None, S, H), lambda b: (b, 0, 0)),     # x (batch squeezed)
            # Weight/bias blocks are grid-invariant (constant index_map), so
            # they are DMA'd only once.
            # TODO(synk): pipeline_mode=pl.Buffered(1) would also single-
            # buffer their VMEM allocation (halves weight footprint on v7x).
            pl.BlockSpec((H, 3 * H), lambda b: (0, 0)),          # fused W_qkv
            pl.BlockSpec((1, 3 * H), lambda b: (0, 0)),          # fused b_qkv
            pl.BlockSpec((H, H), lambda b: (0, 0)),              # W_o
            pl.BlockSpec((1, H), lambda b: (0, 0)),              # b_o
        ],
        out_specs=pl.BlockSpec((None, S, H), lambda b: (b, 0, 0)),
        scratch_shapes=[
            pltpu.VMEM((num_heads, S, head_dim), compute_dtype),  # q head-major
            pltpu.VMEM((num_heads, S, head_dim), compute_dtype),  # k head-major
            pltpu.VMEM((num_heads, S, head_dim), compute_dtype),  # v head-major
            pltpu.VMEM((S, H), compute_dtype),                    # ctx slab
        ],
    )

    return pl.pallas_call(
        kernel,
        out_shape=jax.ShapeDtypeStruct((B, S, H), out_dtype),
        grid_spec=grid_spec,
        compiler_params=pltpu.CompilerParams(
            # TODO(synk): for v7x latency inference with B == 1, add a second
            # parallel grid axis (e.g. query tiles) so both TensorCores work.
            dimension_semantics=("parallel",),
            vmem_limit_bytes=int(vmem_limit),
        ),
    )(x_in, w_qkv, b_qkv, w_o, b_o)


def _reference(x, params, num_heads, compute_dtype=jnp.float32):
    """Pure-JAX reference reproducing the PyTorch forward.

    compute_dtype emulates the kernel's mixed-precision policy (operands cast
    to bf16, accumulation / softmax in f32) so the comparison tolerance can
    stay tight while the math matches the original module.
    """
    B, S, H = x.shape
    hd = H // num_heads
    c = lambda a: a.astype(compute_dtype)

    def proj(w, b):
        return jnp.einsum("bsh,hk->bsk", c(x), c(w),
                          preferred_element_type=jnp.float32) + b[0]

    q = proj(params["wq"], params["bq"])
    k = proj(params["wk"], params["bk"])
    v = proj(params["wv"], params["bv"])

    def split(t):  # (B,S,H) -> (B,nh,S,hd)
        return t.reshape(B, S, num_heads, hd).transpose(0, 2, 1, 3)

    qh, kh, vh = split(c(q)), split(c(k)), split(c(v))
    scores = jnp.einsum("bhqd,bhkd->bhqk", qh, kh,
                        preferred_element_type=jnp.float32) / math.sqrt(hd)
    probs = jax.nn.softmax(scores, axis=-1)
    ctx = jnp.einsum("bhqk,bhkd->bhqd", c(probs), vh,
                     preferred_element_type=jnp.float32)
    ctx = ctx.transpose(0, 2, 1, 3).reshape(B, S, H)
    return jnp.einsum("bsh,hk->bsk", c(ctx), c(params["wo"]),
                      preferred_element_type=jnp.float32) + params["bo"][0]


if __name__ == "__main__":
    # Small config consistent with the module: hidden_size=32, 4 heads, seq=16.
    B, S, H = 2, 16, 32
    num_heads = 4

    key = jax.random.PRNGKey(0)
    keys = jax.random.split(key, 9)
    w_scale = 1.0 / math.sqrt(H)
    params = {
        "wq": (jax.random.normal(keys[0], (H, H), jnp.float32) * w_scale),
        "bq": (jax.random.normal(keys[1], (1, H), jnp.float32) * 0.01),
        "wk": (jax.random.normal(keys[2], (H, H), jnp.float32) * w_scale),
        "bk": (jax.random.normal(keys[3], (1, H), jnp.float32) * 0.01),
        "wv": (jax.random.normal(keys[4], (H, H), jnp.float32) * w_scale),
        "bv": (jax.random.normal(keys[5], (1, H), jnp.float32) * 0.01),
        "wo": (jax.random.normal(keys[6], (H, H), jnp.float32) * w_scale),
        "bo": (jax.random.normal(keys[7], (1, H), jnp.float32) * 0.01),
    }
    x = jax.random.normal(keys[8], (B, S, H), jnp.float32)

    out = attention_forward(x, params, num_heads=num_heads,
                            compute_dtype=jnp.bfloat16)
    out = jax.block_until_ready(out)

    ref = _reference(x, params, num_heads, compute_dtype=jnp.bfloat16)
    assert out.shape == (B, S, H)
    assert jnp.allclose(out, ref, atol=3e-2, rtol=3e-2), "mismatch vs reference"

    print("KERNEL_OK")
</pallas_src>

<mosaic_0001>
module attributes {stable_mosaic.version = 11 : i64} {
  func.func @_attention_kernel(%arg0: i32, %arg1: memref<1x16x32xbf16, #tpu.memory_space<vmem>>, %arg2: memref<32x96xbf16, #tpu.memory_space<vmem>>, %arg3: memref<1x96xf32, #tpu.memory_space<vmem>>, %arg4: memref<32x32xbf16, #tpu.memory_space<vmem>>, %arg5: memref<1x32xf32, #tpu.memory_space<vmem>>, %arg6: memref<1x16x32xf32, #tpu.memory_space<vmem>>, %arg7: memref<4x16x8xbf16, #tpu.memory_space<vmem>>, %arg8: memref<4x16x8xbf16, #tpu.memory_space<vmem>>, %arg9: memref<4x16x8xbf16, #tpu.memory_space<vmem>>, %arg10: memref<16x32xbf16, #tpu.memory_space<vmem>>) attributes {dimension_semantics = [#tpu.dimension_semantics<parallel>], iteration_bounds = array<i64: 2>, scalar_prefetch = 0 : i64, scratch_operands = 4 : i64, tpu.core_type = #tpu.core_type<tc>, window_params = [{transform_indices = @transform_0, window_bounds = array<i64: 1, 16, 32>}, {pipeline_mode = #tpu.pipeline_mode<synchronous>, transform_indices = @transform_1, window_bounds = array<i64: 32, 96>}, {pipeline_mode = #tpu.pipeline_mode<synchronous>, transform_indices = @transform_2, window_bounds = array<i64: 1, 96>}, {pipeline_mode = #tpu.pipeline_mode<synchronous>, transform_indices = @transform_3, window_bounds = array<i64: 32, 32>}, {pipeline_mode = #tpu.pipeline_mode<synchronous>, transform_indices = @transform_4, window_bounds = array<i64: 1, 32>}, {transform_indices = @transform_5, window_bounds = array<i64: 1, 16, 32>}]} {
    %c0 = arith.constant 0 : index
    %c0_0 = arith.constant 0 : index
    %c0_1 = arith.constant 0 : index
    %0 = vector.load %arg1[%c0, %c0_0, %c0_1] : memref<1x16x32xbf16, #tpu.memory_space<vmem>>, vector<1x16x32xbf16>
    %1 = vector.shape_cast %0 : vector<1x16x32xbf16> to vector<16x32xbf16>
    %c0_2 = arith.constant 0 : index
    %c0_3 = arith.constant 0 : index
    %2 = vector.load %arg2[%c0_2, %c0_3] : memref<32x96xbf16, #tpu.memory_space<vmem>>, vector<32x96xbf16>
    %cst = arith.constant dense<0.000000e+00> : vector<16x96xf32>
    %3 = tpu.matmul %1, %2, %cst {dimension_numbers = #tpu.dot_dimension_numbers<[1], [0], [0], [1], [0, 0, 1, 1], [], []>} : vector<16x32xbf16>, vector<32x96xbf16>, vector<16x96xf32> -> vector<16x96xf32>
    %4 = vector.extract_strided_slice %3 {offsets = [0, 0], sizes = [16, 8], strides = [1, 1]} : vector<16x96xf32> to vector<16x8xf32>
    %c0_4 = arith.constant 0 : index
    %c0_5 = arith.constant 0 : index
    %5 = vector.load %arg3[%c0_4, %c0_5] : memref<1x96xf32, #tpu.memory_space<vmem>>, vector<1x8xf32>
    %6 = vector.broadcast %5 : vector<1x8xf32> to vector<16x8xf32>
    %7 = arith.addf %4, %6 : vector<16x8xf32>
    %8 = arith.truncf %7 : vector<16x8xf32> to vector<16x8xbf16>
    %c0_6 = arith.constant 0 : index
    %c0_7 = arith.constant 0 : index
    %c0_8 = arith.constant 0 : index
    %9 = vector.load %arg7[%c0_6, %c0_7, %c0_8] : memref<4x16x8xbf16, #tpu.memory_space<vmem>>, vector<1x16x8xbf16>
    %10 = vector.shape_cast %9 : vector<1x16x8xbf16> to vector<16x8xbf16>
    %11 = vector.shape_cast %8 : vector<16x8xbf16> to vector<1x16x8xbf16>
    tpu.vector_store %arg7[%c0_6, %c0_7, %c0_8], %11 {strides = array<i32>} : memref<4x16x8xbf16, #tpu.memory_space<vmem>>, vector<1x16x8xbf16>,
    %12 = vector.extract_strided_slice %3 {offsets = [0, 32], sizes = [16, 8], strides = [1, 1]} : vector<16x96xf32> to vector<16x8xf32>
    %c0_9 = arith.constant 0 : index
    %c32 = arith.constant 32 : index
    %13 = vector.load %arg3[%c0_9, %c32] : memref<1x96xf32, #tpu.memory_space<vmem>>, vector<1x8xf32>
    %14 = vector.broadcast %13 : vector<1x8xf32> to vector<16x8xf32>
    %15 = arith.addf %12, %14 : vector<16x8xf32>
    %16 = arith.truncf %15 : vector<16x8xf32> to vector<16x8xbf16>
    %c0_10 = arith.constant 0 : index
    %c0_11 = arith.constant 0 : index
    %c0_12 = arith.constant 0 : index
    %17 = vector.load %arg8[%c0_10, %c0_11, %c0_12] : memref<4x16x8xbf16, #tpu.memory_space<vmem>>, vector<1x16x8xbf16>
    %18 = vector.shape_cast %17 : vector<1x16x8xbf16> to vector<16x8xbf16>
    %19 = vector.shape_cast %16 : vector<16x8xbf16> to vector<1x16x8xbf16>
    tpu.vector_store %arg8[%c0_10, %c0_11, %c0_12], %19 {strides = array<i32>} : memref<4x16x8xbf16, #tpu.memory_space<vmem>>, vector<1x16x8xbf16>,
    %20 = vector.extract_strided_slice %3 {offsets = [0, 64], sizes = [16, 8], strides = [1, 1]} : vector<16x96xf32> to vector<16x8xf32>
    %c0_13 = arith.constant 0 : index
    %c64 = arith.constant 64 : index
    %21 = vector.load %arg3[%c0_13, %c64] : memref<1x96xf32, #tpu.memory_space<vmem>>, vector<1x8xf32>
    %22 = vector.broadcast %21 : vector<1x8xf32> to vector<16x8xf32>
    %23 = arith.addf %20, %22 : vector<16x8xf32>
    %24 = arith.truncf %23 : vector<16x8xf32> to vector<16x8xbf16>
    %c0_14 = arith.constant 0 : index
    %c0_15 = arith.constant 0 : index
    %c0_16 = arith.constant 0 : index
    %25 = vector.load %arg9[%c0_14, %c0_15, %c0_16] : memref<4x16x8xbf16, #tpu.memory_space<vmem>>, vector<1x16x8xbf16>
    %26 = vector.shape_cast %25 : vector<1x16x8xbf16> to vector<16x8xbf16>
    %27 = vector.shape_cast %24 : vector<16x8xbf16> to vector<1x16x8xbf16>
    tpu.vector_store %arg9[%c0_14, %c0_15, %c0_16], %27 {strides = array<i32>} : memref<4x16x8xbf16, #tpu.memory_space<vmem>>, vector<1x16x8xbf16>,
    %28 = vector.extract_strided_slice %3 {offsets = [0, 8], sizes = [16, 8], strides = [1, 1]} : vector<16x96xf32> to vector<16x8xf32>
    %c0_17 = arith.constant 0 : index
    %c8 = arith.constant 8 : index
    %29 = vector.load %arg3[%c0_17, %c8] : memref<1x96xf32, #tpu.memory_space<vmem>>, vector<1x8xf32>
    %30 = vector.broadcast %29 : vector<1x8xf32> to vector<16x8xf32>
    %31 = arith.addf %28, %30 : vector<16x8xf32>
    %32 = arith.truncf %31 : vector<16x8xf32> to vector<16x8xbf16>
    %c1 = arith.constant 1 : index
    %c0_18 = arith.constant 0 : index
    %c0_19 = arith.constant 0 : index
    %33 = vector.load %arg7[%c1, %c0_18, %c0_19] : memref<4x16x8xbf16, #tpu.memory_space<vmem>>, vector<1x16x8xbf16>
    %34 = vector.shape_cast %33 : vector<1x16x8xbf16> to vector<16x8xbf16>
    %35 = vector.shape_cast %32 : vector<16x8xbf16> to vector<1x16x8xbf16>
    tpu.vector_store %arg7[%c1, %c0_18, %c0_19], %35 {strides = array<i32>} : memref<4x16x8xbf16, #tpu.memory_space<vmem>>, vector<1x16x8xbf16>,
    %36 = vector.extract_strided_slice %3 {offsets = [0, 40], sizes = [16, 8], strides = [1, 1]} : vector<16x96xf32> to vector<16x8xf32>
    %c0_20 = arith.constant 0 : index
    %c40 = arith.constant 40 : index
    %37 = vector.load %arg3[%c0_20, %c40] : memref<1x96xf32, #tpu.memory_space<vmem>>, vector<1x8xf32>
    %38 = vector.broadcast %37 : vector<1x8xf32> to vector<16x8xf32>
    %39 = arith.addf %36, %38 : vector<16x8xf32>
    %40 = arith.truncf %39 : vector<16x8xf32> to vector<16x8xbf16>
    %c1_21 = arith.constant 1 : index
    %c0_22 = arith.constant 0 : index
    %c0_23 = arith.constant 0 : index
    %41 = vector.load %arg8[%c1_21, %c0_22, %c0_23] : memref<4x16x8xbf16, #tpu.memory_space<vmem>>, vector<1x16x8xbf16>
    %42 = vector.shape_cast %41 : vector<1x16x8xbf16> to vector<16x8xbf16>
    %43 = vector.shape_cast %40 : vector<16x8xbf16> to vector<1x16x8xbf16>
    tpu.vector_store %arg8[%c1_21, %c0_22, %c0_23], %43 {strides = array<i32>} : memref<4x16x8xbf16, #tpu.memory_space<vmem>>, vector<1x16x8xbf16>,
    %44 = vector.extract_strided_slice %3 {offsets = [0, 72], sizes = [16, 8], strides = [1, 1]} : vector<16x96xf32> to vector<16x8xf32>
    %c0_24 = arith.constant 0 : index
    %c72 = arith.constant 72 : index
    %45 = vector.load %arg3[%c0_24, %c72] : memref<1x96xf32, #tpu.memory_space<vmem>>, vector<1x8xf32>
    %46 = vector.broadcast %45 : vector<1x8xf32> to vector<16x8xf32>
    %47 = arith.addf %44, %46 : vector<16x8xf32>
    %48 = arith.truncf %47 : vector<16x8xf32> to vector<16x8xbf16>
    %c1_25 = arith.constant 1 : index
    %c0_26 = arith.constant 0 : index
    %c0_27 = arith.constant 0 : index
    %49 = vector.load %arg9[%c1_25, %c0_26, %c0_27] : memref<4x16x8xbf16, #tpu.memory_space<vmem>>, vector<1x16x8xbf16>
    %50 = vector.shape_cast %49 : vector<1x16x8xbf16> to vector<16x8xbf16>
    %51 = vector.shape_cast %48 : vector<16x8xbf16> to vector<1x16x8xbf16>
    tpu.vector_store %arg9[%c1_25, %c0_26, %c0_27], %51 {strides = array<i32>} : memref<4x16x8xbf16, #tpu.memory_space<vmem>>, vector<1x16x8xbf16>,
    %52 = vector.extract_strided_slice %3 {offsets = [0, 16], sizes = [16, 8], strides = [1, 1]} : vector<16x96xf32> to vector<16x8xf32>
    %c0_28 = arith.constant 0 : index
    %c16 = arith.constant 16 : index
    %53 = vector.load %arg3[%c0_28, %c16] : memref<1x96xf32, #tpu.memory_space<vmem>>, vector<1x8xf32>
    %54 = vector.broadcast %53 : vector<1x8xf32> to vector<16x8xf32>
    %55 = arith.addf %52, %54 : vector<16x8xf32>
    %56 = arith.truncf %55 : vector<16x8xf32> to vector<16x8xbf16>
    %c2 = arith.constant 2 : index
    %c0_29 = arith.constant 0 : index
    %c0_30 = arith.constant 0 : index
    %57 = vector.load %arg7[%c2, %c0_29, %c0_30] : memref<4x16x8xbf16, #tpu.memory_space<vmem>>, vector<1x16x8xbf16>
    %58 = vector.shape_cast %57 : vector<1x16x8xbf16> to vector<16x8xbf16>
    %59 = vector.shape_cast %56 : vector<16x8xbf16> to vector<1x16x8xbf16>
    tpu.vector_store %arg7[%c2, %c0_29, %c0_30], %59 {strides = array<i32>} : memref<4x16x8xbf16, #tpu.memory_space<vmem>>, vector<1x16x8xbf16>,
    %60 = vector.extract_strided_slice %3 {offsets = [0, 48], sizes = [16, 8], strides = [1, 1]} : vector<16x96xf32> to vector<16x8xf32>
    %c0_31 = arith.constant 0 : index
    %c48 = arith.constant 48 : index
    %61 = vector.load %arg3[%c0_31, %c48] : memref<1x96xf32, #tpu.memory_space<vmem>>, vector<1x8xf32>
    %62 = vector.broadcast %61 : vector<1x8xf32> to vector<16x8xf32>
    %63 = arith.addf %60, %62 : vector<16x8xf32>
    %64 = arith.truncf %63 : vector<16x8xf32> to vector<16x8xbf16>
    %c2_32 = arith.constant 2 : index
    %c0_33 = arith.constant 0 : index
    %c0_34 = arith.constant 0 : index
    %65 = vector.load %arg8[%c2_32, %c0_33, %c0_34] : memref<4x16x8xbf16, #tpu.memory_space<vmem>>, vector<1x16x8xbf16>
    %66 = vector.shape_cast %65 : vector<1x16x8xbf16> to vector<16x8xbf16>
    %67 = vector.shape_cast %64 : vector<16x8xbf16> to vector<1x16x8xbf16>
    tpu.vector_store %arg8[%c2_32, %c0_33, %c0_34], %67 {strides = array<i32>} : memref<4x16x8xbf16, #tpu.memory_space<vmem>>, vector<1x16x8xbf16>,
    %68 = vector.extract_strided_slice %3 {offsets = [0, 80], sizes = [16, 8], strides = [1, 1]} : vector<16x96xf32> to vector<16x8xf32>
    %c0_35 = arith.constant 0 : index
    %c80 = arith.constant 80 : index
    %69 = vector.load %arg3[%c0_35, %c80] : memref<1x96xf32, #tpu.memory_space<vmem>>, vector<1x8xf32>
    %70 = vector.broadcast %69 : vector<1x8xf32> to vector<16x8xf32>
    %71 = arith.addf %68, %70 : vector<16x8xf32>
    %72 = arith.truncf %71 : vector<16x8xf32> to vector<16x8xbf16>
    %c2_36 = arith.constant 2 : index
    %c0_37 = arith.constant 0 : index
    %c0_38 = arith.constant 0 : index
    %73 = vector.load %arg9[%c2_36, %c0_37, %c0_38] : memref<4x16x8xbf16, #tpu.memory_space<vmem>>, vector<1x16x8xbf16>
    %74 = vector.shape_cast %73 : vector<1x16x8xbf16> to vector<16x8xbf16>
    %75 = vector.shape_cast %72 : vector<16x8xbf16> to vector<1x16x8xbf16>
    tpu.vector_store %arg9[%c2_36, %c0_37, %c0_38], %75 {strides = array<i32>} : memref<4x16x8xbf16, #tpu.memory_space<vmem>>, vector<1x16x8xbf16>,
    %76 = vector.extract_strided_slice %3 {offsets = [0, 24], sizes = [16, 8], strides = [1, 1]} : vector<16x96xf32> to vector<16x8xf32>
    %c0_39 = arith.constant 0 : index
    %c24 = arith.constant 24 : index
    %77 = vector.load %arg3[%c0_39, %c24] : memref<1x96xf32, #tpu.memory_space<vmem>>, vector<1x8xf32>
    %78 = vector.broadcast %77 : vector<1x8xf32> to vector<16x8xf32>
    %79 = arith.addf %76, %78 : vector<16x8xf32>
    %80 = arith.truncf %79 : vector<16x8xf32> to vector<16x8xbf16>
    %c3 = arith.constant 3 : index
    %c0_40 = arith.constant 0 : index
    %c0_41 = arith.constant 0 : index
    %81 = vector.load %arg7[%c3, %c0_40, %c0_41] : memref<4x16x8xbf16, #tpu.memory_space<vmem>>, vector<1x16x8xbf16>
    %82 = vector.shape_cast %81 : vector<1x16x8xbf16> to vector<16x8xbf16>
    %83 = vector.shape_cast %80 : vector<16x8xbf16> to vector<1x16x8xbf16>
    tpu.vector_store %arg7[%c3, %c0_40, %c0_41], %83 {strides = array<i32>} : memref<4x16x8xbf16, #tpu.memory_space<vmem>>, vector<1x16x8xbf16>,
    %84 = vector.extract_strided_slice %3 {offsets = [0, 56], sizes = [16, 8], strides = [1, 1]} : vector<16x96xf32> to vector<16x8xf32>
    %c0_42 = arith.constant 0 : index
    %c56 = arith.constant 56 : index
    %85 = vector.load %arg3[%c0_42, %c56] : memref<1x96xf32, #tpu.memory_space<vmem>>, vector<1x8xf32>
    %86 = vector.broadcast %85 : vector<1x8xf32> to vector<16x8xf32>
    %87 = arith.addf %84, %86 : vector<16x8xf32>
    %88 = arith.truncf %87 : vector<16x8xf32> to vector<16x8xbf16>
    %c3_43 = arith.constant 3 : index
    %c0_44 = arith.constant 0 : index
    %c0_45 = arith.constant 0 : index
    %89 = vector.load %arg8[%c3_43, %c0_44, %c0_45] : memref<4x16x8xbf16, #tpu.memory_space<vmem>>, vector<1x16x8xbf16>
    %90 = vector.shape_cast %89 : vector<1x16x8xbf16> to vector<16x8xbf16>
    %91 = vector.shape_cast %88 : vector<16x8xbf16> to vector<1x16x8xbf16>
    tpu.vector_store %arg8[%c3_43, %c0_44, %c0_45], %91 {strides = array<i32>} : memref<4x16x8xbf16, #tpu.memory_space<vmem>>, vector<1x16x8xbf16>,
    %92 = vector.extract_strided_slice %3 {offsets = [0, 88], sizes = [16, 8], strides = [1, 1]} : vector<16x96xf32> to vector<16x8xf32>
    %c0_46 = arith.constant 0 : index
    %c88 = arith.constant 88 : index
    %93 = vector.load %arg3[%c0_46, %c88] : memref<1x96xf32, #tpu.memory_space<vmem>>, vector<1x8xf32>
    %94 = vector.broadcast %93 : vector<1x8xf32> to vector<16x8xf32>
    %95 = arith.addf %92, %94 : vector<16x8xf32>
    %96 = arith.truncf %95 : vector<16x8xf32> to vector<16x8xbf16>
    %c3_47 = arith.constant 3 : index
    %c0_48 = arith.constant 0 : index
    %c0_49 = arith.constant 0 : index
    %97 = vector.load %arg9[%c3_47, %c0_48, %c0_49] : memref<4x16x8xbf16, #tpu.memory_space<vmem>>, vector<1x16x8xbf16>
    %98 = vector.shape_cast %97 : vector<1x16x8xbf16> to vector<16x8xbf16>
    %99 = vector.shape_cast %96 : vector<16x8xbf16> to vector<1x16x8xbf16>
    tpu.vector_store %arg9[%c3_47, %c0_48, %c0_49], %99 {strides = array<i32>} : memref<4x16x8xbf16, #tpu.memory_space<vmem>>, vector<1x16x8xbf16>,
    %c0_50 = arith.constant 0 : index
    %c0_51 = arith.constant 0 : index
    %c0_52 = arith.constant 0 : index
    %100 = vector.load %arg7[%c0_50, %c0_51, %c0_52] : memref<4x16x8xbf16, #tpu.memory_space<vmem>>, vector<4x16x8xbf16>
    %c0_53 = arith.constant 0 : index
    %c0_54 = arith.constant 0 : index
    %c0_55 = arith.constant 0 : index
    %101 = vector.load %arg8[%c0_53, %c0_54, %c0_55] : memref<4x16x8xbf16, #tpu.memory_space<vmem>>, vector<4x16x8xbf16>
    %c0_56 = arith.constant 0 : index
    %c0_57 = arith.constant 0 : index
    %c0_58 = arith.constant 0 : index
    %102 = vector.load %arg9[%c0_56, %c0_57, %c0_58] : memref<4x16x8xbf16, #tpu.memory_space<vmem>>, vector<4x16x8xbf16>
    "tpu.trace_start"() <{level = 10 : i32, message = "nqd,nkd->nqk"}> : () -> ()
    %cst_59 = arith.constant dense<0.000000e+00> : vector<4x16x16xf32>
    %103 = tpu.matmul %100, %101, %cst_59 {dimension_numbers = #tpu.dot_dimension_numbers<[2], [2], [1], [1], [0, 0, 0, 1, 1, 1], [0], [0]>} : vector<4x16x8xbf16>, vector<4x16x8xbf16>, vector<4x16x16xf32> -> vector<4x16x16xf32>
    "tpu.trace_stop"() : () -> ()
    %cst_60 = arith.constant dense<0xFF800000> : vector<4x16xf32>
    %104 = vector.multi_reduction <maximumf>, %103, %cst_60 [2] : vector<4x16x16xf32> to vector<4x16xf32>
    %105 = vector.shape_cast %104 : vector<4x16xf32> to vector<4x16x1xf32>
    %106 = vector.broadcast %105 : vector<4x16x1xf32> to vector<4x16x16xf32>
    %107 = arith.subf %103, %106 : vector<4x16x16xf32>
    %108 = math.exp %107 : vector<4x16x16xf32>
    %cst_61 = arith.constant dense<0.000000e+00> : vector<4x16xf32>
    %109 = vector.multi_reduction <add>, %108, %cst_61 [2] : vector<4x16x16xf32> to vector<4x16xf32>
    %110 = vector.shape_cast %109 : vector<4x16xf32> to vector<4x16x1xf32>
    %111 = tpu.reciprocal %110 {approx = true} : vector<4x16x1xf32> -> vector<4x16x1xf32>
    %112 = vector.broadcast %111 : vector<4x16x1xf32> to vector<4x16x16xf32>
    %113 = arith.mulf %108, %112 : vector<4x16x16xf32>
    %114 = arith.truncf %113 : vector<4x16x16xf32> to vector<4x16x16xbf16>
    "tpu.trace_start"() <{level = 10 : i32, message = "nqk,nkd->nqd"}> : () -> ()
    %cst_62 = arith.constant dense<0.000000e+00> : vector<4x16x8xf32>
    %115 = tpu.matmul %114, %102, %cst_62 {dimension_numbers = #tpu.dot_dimension_numbers<[2], [1], [1], [2], [0, 0, 0, 1, 1, 2], [0], [0]>} : vector<4x16x16xbf16>, vector<4x16x8xbf16>, vector<4x16x8xf32> -> vector<4x16x8xf32>
    "tpu.trace_stop"() : () -> ()
    %116 = vector.extract_strided_slice %115 {offsets = [0, 0, 0], sizes = [1, 16, 8], strides = [1, 1, 1]} : vector<4x16x8xf32> to vector<1x16x8xf32>
    %117 = vector.shape_cast %116 : vector<1x16x8xf32> to vector<16x8xf32>
    %118 = arith.truncf %117 : vector<16x8xf32> to vector<16x8xbf16>
    %c0_63 = arith.constant 0 : index
    %c0_64 = arith.constant 0 : index
    %119 = vector.load %arg10[%c0_63, %c0_64] : memref<16x32xbf16, #tpu.memory_space<vmem>>, vector<16x8xbf16>
    tpu.vector_store %arg10[%c0_63, %c0_64], %118 {strides = array<i32>} : memref<16x32xbf16, #tpu.memory_space<vmem>>, vector<16x8xbf16>,
    %120 = vector.extract_strided_slice %115 {offsets = [1, 0, 0], sizes = [1, 16, 8], strides = [1, 1, 1]} : vector<4x16x8xf32> to vector<1x16x8xf32>
    %121 = vector.shape_cast %120 : vector<1x16x8xf32> to vector<16x8xf32>
    %122 = arith.truncf %121 : vector<16x8xf32> to vector<16x8xbf16>
    %c0_65 = arith.constant 0 : index
    %c8_66 = arith.constant 8 : index
    %123 = vector.load %arg10[%c0_65, %c8_66] : memref<16x32xbf16, #tpu.memory_space<vmem>>, vector<16x8xbf16>
    tpu.vector_store %arg10[%c0_65, %c8_66], %122 {strides = array<i32>} : memref<16x32xbf16, #tpu.memory_space<vmem>>, vector<16x8xbf16>,
    %124 = vector.extract_strided_slice %115 {offsets = [2, 0, 0], sizes = [1, 16, 8], strides = [1, 1, 1]} : vector<4x16x8xf32> to vector<1x16x8xf32>
    %125 = vector.shape_cast %124 : vector<1x16x8xf32> to vector<16x8xf32>
    %126 = arith.truncf %125 : vector<16x8xf32> to vector<16x8xbf16>
    %c0_67 = arith.constant 0 : index
    %c16_68 = arith.constant 16 : index
    %127 = vector.load %arg10[%c0_67, %c16_68] : memref<16x32xbf16, #tpu.memory_space<vmem>>, vector<16x8xbf16>
    tpu.vector_store %arg10[%c0_67, %c16_68], %126 {strides = array<i32>} : memref<16x32xbf16, #tpu.memory_space<vmem>>, vector<16x8xbf16>,
    %128 = vector.extract_strided_slice %115 {offsets = [3, 0, 0], sizes = [1, 16, 8], strides = [1, 1, 1]} : vector<4x16x8xf32> to vector<1x16x8xf32>
    %129 = vector.shape_cast %128 : vector<1x16x8xf32> to vector<16x8xf32>
    %130 = arith.truncf %129 : vector<16x8xf32> to vector<16x8xbf16>
    %c0_69 = arith.constant 0 : index
    %c24_70 = arith.constant 24 : index
    %131 = vector.load %arg10[%c0_69, %c24_70] : memref<16x32xbf16, #tpu.memory_space<vmem>>, vector<16x8xbf16>
    tpu.vector_store %arg10[%c0_69, %c24_70], %130 {strides = array<i32>} : memref<16x32xbf16, #tpu.memory_space<vmem>>, vector<16x8xbf16>,
    %c0_71 = arith.constant 0 : index
    %c0_72 = arith.constant 0 : index
    %132 = vector.load %arg10[%c0_71, %c0_72] : memref<16x32xbf16, #tpu.memory_space<vmem>>, vector<16x32xbf16>
    %c0_73 = arith.constant 0 : index
    %c0_74 = arith.constant 0 : index
    %133 = vector.load %arg4[%c0_73, %c0_74] : memref<32x32xbf16, #tpu.memory_space<vmem>>, vector<32x32xbf16>
    %cst_75 = arith.constant dense<0.000000e+00> : vector<16x32xf32>
    %134 = tpu.matmul %132, %133, %cst_75 {dimension_numbers = #tpu.dot_dimension_numbers<[1], [0], [0], [1], [0, 0, 1, 1], [], []>} : vector<16x32xbf16>, vector<32x32xbf16>, vector<16x32xf32> -> vector<16x32xf32>
    %c0_76 = arith.constant 0 : index
    %c0_77 = arith.constant 0 : index
    %135 = vector.load %arg5[%c0_76, %c0_77] : memref<1x32xf32, #tpu.memory_space<vmem>>, vector<1x32xf32>
    %136 = vector.broadcast %135 : vector<1x32xf32> to vector<16x32xf32>
    %137 = arith.addf %134, %136 : vector<16x32xf32>
    %c0_78 = arith.constant 0 : index
    %c0_79 = arith.constant 0 : index
    %c0_80 = arith.constant 0 : index
    %138 = vector.load %arg6[%c0_78, %c0_79, %c0_80] : memref<1x16x32xf32, #tpu.memory_space<vmem>>, vector<1x16x32xf32>
    %139 = vector.shape_cast %138 : vector<1x16x32xf32> to vector<16x32xf32>
    %140 = vector.shape_cast %137 : vector<16x32xf32> to vector<1x16x32xf32>
    tpu.vector_store %arg6[%c0_78, %c0_79, %c0_80], %140 {strides = array<i32>} : memref<1x16x32xf32, #tpu.memory_space<vmem>>, vector<1x16x32xf32>,
    return
  }
  func.func @transform_0(%arg0: i32) -> (i32, i32, i32) {
    %c0_i32 = arith.constant 0 : i32
    %c0_i32_0 = arith.constant 0 : i32
    %c0_i32_1 = arith.constant 0 : i32
    return %arg0, %c0_i32, %c0_i32_0 : i32, i32, i32
  }
  func.func @transform_1(%arg0: i32) -> (i32, i32) {
    %c0_i32 = arith.constant 0 : i32
    %c0_i32_0 = arith.constant 0 : i32
    %c0_i32_1 = arith.constant 0 : i32
    return %c0_i32, %c0_i32_0 : i32, i32
  }
  func.func @transform_2(%arg0: i32) -> (i32, i32) {
    %c0_i32 = arith.constant 0 : i32
    %c0_i32_0 = arith.constant 0 : i32
    %c0_i32_1 = arith.constant 0 : i32
    return %c0_i32, %c0_i32_0 : i32, i32
  }
  func.func @transform_3(%arg0: i32) -> (i32, i32) {
    %c0_i32 = arith.constant 0 : i32
    %c0_i32_0 = arith.constant 0 : i32
    %c0_i32_1 = arith.constant 0 : i32
    return %c0_i32, %c0_i32_0 : i32, i32
  }
  func.func @transform_4(%arg0: i32) -> (i32, i32) {
    %c0_i32 = arith.constant 0 : i32
    %c0_i32_0 = arith.constant 0 : i32
    %c0_i32_1 = arith.constant 0 : i32
    return %c0_i32, %c0_i32_0 : i32, i32
  }
  func.func @transform_5(%arg0: i32) -> (i32, i32, i32) {
    %c0_i32 = arith.constant 0 : i32
    %c0_i32_0 = arith.constant 0 : i32
    %c0_i32_1 = arith.constant 0 : i32
    return %arg0, %c0_i32, %c0_i32_0 : i32, i32, i32
  }
}

</mosaic_0001>

<bundles_post_ra>
// kernel: tpu_custom_call.1
= control target key start
LH: loop header
LB: loop body
LE: loop exit
PB: predicated region body
PF: predicated region fallthrough
CT: control target
= control target key end

     0   :  { %10 = vsyncpa [#allocation7], 0  ;;  %s2006_s0 = inlined_call_operand.hbm [shape: bf16[2,16,32], index: 0, kind: input, shape index: {}]   ;;  %s2007_s1 = inlined_call_operand.hbm [shape: bf16[32,96], index: 1, kind: input, shape index: {}]   ;;  %s2008_s2 = inlined_call_operand.vmem [shape: f32[1,96], index: 2, kind: input, shape index: {}]   ;;  %s2009_s3 = inlined_call_operand.hbm [shape: bf16[32,32], index: 3, kind: input, shape index: {}]   ;;  %s2010_s4 = inlined_call_operand.vmem [shape: f32[1,32], index: 4, kind: input, shape index: {}]   ;;  %s2011_s5 = inlined_call_operand.hbm [shape: f32[2,16,32], index: 5, kind: output, shape index: {}]  }
   0x1   :  { %12 = vsyncpa [#allocation7 + $0x1], 0 }
   0x2   :  { %13 = vsyncpa [#allocation10], 0 }
   0x3   :  { %14 = vsyncpa [#allocation8], 0 }
   0x4   :  { %16 = vsyncpa [#allocation8 + $0x1], 0  ;;  %s1663_s18 = smov 0   ;;  %s1665_s19 = smov 0  }
   0x5   :  { %s1667_s20 = smov 0   ;;  %s1669_s21 = smov 0  }
   0x6 LB: > { %s1684_s22 = sadd.s32 4294967295, %s1608_s21   ;;  %s1195_s23 = sadd.s32 4294967294, %s1608_s21   ;;  %s1608_s21 = sphi %s1669_s21, %s2031_s21   ;;  %s1604_s20 = sphi %s1667_s20, %s2030_s20   ;;  %s1600_s19 = sphi %s1665_s19, %s2029_s19   ;;  %s1596_s18 = sphi %s1663_s18, %s2028_s18  }
   0x7   : > { %p42_p0 = scmp.ne.s32.totalorder %s1600_s19, %s1596_s18  ;;  %p2012_p1 = scmp.eq.s32.totalorder %s1684_s22, 0 }
   0x8   : > { %p156_p3 = scmp.eq.s32.totalorder %s1195_s23, 1  ;;  %p1196_p5 = scmp.ge.s32.totalorder %s1608_s21, 1 }
   0x9   : > { %p1693_p4 = por %p2012_p1, %p42_p0  ;;  %p163_p7 = scmp.lt.s32.totalorder %s1608_s21, 3 }
   0xa   : > { %p1698_p6 = por %p156_p3, %p42_p0  ;;  %s1610_s27 = smov [#allocation9]  }
   0xb   : > { %s2015_s24 = scalar_select %p1693_p4, 1, 0 }
   0xc   : > { %s2016_s25 = scalar_select %p1698_p6, 1, 0 }
   0xd   : > { %p1703_p8 = pnand %p1196_p5, %p163_p7  ;;  %s175_s28 = sshll.u32 %s1610_s27, 4  ;;  %s1707_s28 = int_to_ptr.vmem [resolvable:$true] %s175_s28 }
   0xe   : > { %s1611_s30 = smov [#allocation11]   ;;  %s1452_s9 = scalar_lea.hbm %s2007_s1, 256 }
   0xf   : > { %p1341_p9 = pneg %p1703_p8  ;;  %s191_s6 = sshll.u32 %s1611_s30, 4  ;;  %s1718_s6 = int_to_ptr.vmem [resolvable:$true] %s191_s6 }
  0x10   : > { %p1453_p12 = scmp.ne.s32.totalorder %s2007_s1, %s1452_s9  ;;  %p1459_p5 = scmp.lt.u32.totalorder %s1452_s9, %s2007_s1 }
  0x11   : > { %p1714_p11 = pnand %p1341_p9, %p2012_p1 }
  0x13   : > { %p1454_p13 = pneg %p1714_p11 }
  0x15   : > { %p1455_p0 = pnand %p1454_p13, %p1453_p12 }
  0x17   : > { %p1456_p3 = pneg %p1455_p0 }
  0x19   : > { %p1461_p7 = pnand %p1459_p5, %p1456_p3 }
  0x1b   : > { %1464 = shalt.err (!%p1461_p7)
}
  0x1c   : > { %s1465_s14 = scalar_lea.vmem %s1707_s28, 256  ;;  %p1473_p2 = scmp.lt.s32.totalorder %s1707_s28, %s1707_s28 }
  0x1d   : > { %p1466_p9 = scmp.ne.s32.totalorder %s1707_s28, %s1465_s14  ;;  %p1474_p12 = scmp.lt.s32.totalorder %s1465_s14, %s1465_s14 }
  0x1f   : > { %p1468_p10 = pnand %p1466_p9, %p1454_p13  ;;  %p1475_p0 = por %p1474_p12, %p1473_p2 }
  0x21   : > { %p1469_p1 = pneg %p1468_p10 }
  0x23   : > { %p1476_p6 = pnand %p1475_p0, %p1469_p1 }
  0x25   : > { %1479 = shalt.err (!%p1476_p6)
}
  0x26   : > { %s1612_s15 = smov 64   ;;  %s1613_s16 = smov 4  }
  0x27   : > { %1344 = dma.hbm_to_vmem [thread:$0]  (!%p1714_p11), %s2007_s1, 256, %s1707_s28, [#allocation10], %s1612_s15, %s1612_s15, %s1613_s16  }
  0x28   : > { %s1480_s7 = scalar_lea.hbm %s2009_s3, 256 }
  0x29   : > { %p1481_p1 = scmp.ne.s32.totalorder %s2009_s3, %s1480_s7  ;;  %p1487_p10 = scmp.lt.u32.totalorder %s1480_s7, %s2009_s3 }
  0x2b   : > { %p1483_p2 = pnand %p1481_p1, %p1454_p13 }
  0x2d   : > { %p1484_p6 = pneg %p1483_p2 }
  0x2f   : > { %p1489_p3 = pnand %p1487_p10, %p1484_p6 }
  0x31   : > { %1492 = shalt.err (!%p1489_p3)
}
  0x32   : > { %s1493_s28 = scalar_lea.vmem %s1718_s6, 256  ;;  %p1501_p12 = scmp.lt.s32.totalorder %s1718_s6, %s1718_s6 }
  0x33   : > { %p1494_p5 = scmp.ne.s32.totalorder %s1718_s6, %s1493_s28  ;;  %p1502_p0 = scmp.lt.s32.totalorder %s1493_s28, %s1493_s28 }
  0x35   : > { %p1496_p7 = pnand %p1494_p5, %p1454_p13  ;;  %p1503_p1 = por %p1502_p0, %p1501_p12 }
  0x37   : > { %p1497_p9 = pneg %p1496_p7 }
  0x39   : > { %p1504_p2 = pnand %p1503_p1, %p1497_p9 }
  0x3b   : > { %1507 = shalt.err (!%p1504_p2)
}
  0x3c   : > { %1347 = dma.hbm_to_vmem [thread:$0]  (!%p1714_p11), %s2009_s3, 256, %s1718_s6, [#allocation10], %s1612_s15, %s1612_s15, %s1613_s16  }
  0x3d   : > { %s1779_s29 = sadd.s32 1, %s1608_s21   ;;  %s29_s14 = sadd.s32 1, %s1604_s20 }
  0x3e   : > { %s26_s17 = ssub.s32 %s1608_s21, %s1779_s29  ;;  %p36_p13 = scmp.ne.s32.totalorder %s1604_s20, %s1600_s19 }
  0x3f   : > { %p27_p6 = scmp.eq.s32.totalorder %s26_s17, 0  ;;  %p37_p10 = scmp.eq.s32.totalorder %s1608_s21, 0 }
  0x40   : > { %p2019_p3 = scmp.eq.s32.totalorder %s1684_s22, 1  ;;  %p1358_p7 = scmp.lt.s32.totalorder %s1608_s21, 2 }
  0x41   : > { %s1795_s27 = scalar_select %p27_p6, %s1604_s20, %s29_s14  }
  0x42   : > { %p1789_p5 = por %p2019_p3, %p36_p13  ;;  %p38_p9 = por %p37_p10, %p36_p13 }
  0x43   : > { %s208_s30 = sand.u32 1, %s1604_s20   ;;  %s1241_s6 = sshll.u32 %s1608_s21, 7 }
  0x44   : > { %s2020_s23 = scalar_select %p1789_p5, 1, 0 }
  0x45   : > { %s1200_s7 = sshll.u32 %s208_s30, 3  ;;  %s1802_s10 = scalar_lea.hbm %s2006_s0, %s1241_s6 }
  0x46   : > { %s212_s11 = scalar_lea.vmem [#allocation6], %s1200_s7  ;;  %p1806_p11 = pnand %p1358_p7, %p38_p9 }
  0x47   : > { %s219_s28 = sshll.u32 %s212_s11, 4  ;;  %s1810_s13 = scalar_lea.sflag [#allocation7], %s208_s30  ;;  %s1804_s28 = int_to_ptr.vmem [resolvable:$true] %s219_s28 }
  0x48   : > { %s1508_s14 = scalar_lea.hbm %s1802_s10, 128  ;;  %p1510_p0 = pneg %p1806_p11 }
  0x49   : > { %p1509_p12 = scmp.ne.s32.totalorder %s1802_s10, %s1508_s14  ;;  %s1513_s6 = scalar_lea.hbm %s2006_s0, 256 }
  0x4a   : > { %p1514_p13 = scmp.lt.u32.totalorder %s1802_s10, %s2006_s0  ;;  %p1515_p6 = scmp.lt.u32.totalorder %s1513_s6, %s1508_s14 }
  0x4b   : > { %p1511_p1 = pnand %p1510_p0, %p1509_p12  ;;  %p1517_p3 = scmp.lt.u32.totalorder %s1508_s14, %s1802_s10 }
  0x4c   : > { %p1516_p10 = por %p1515_p6, %p1514_p13 }
  0x4d   : > { %p1512_p2 = pneg %p1511_p1 }
  0x4e   : > { %p1518_p7 = por %p1517_p3, %p1516_p10 }
  0x50   : > { %p1519_p9 = pnand %p1518_p7, %p1512_p2 }
  0x52   : > { %1522 = shalt.err (!%p1519_p9)
}
  0x53   : > { %s1523_s30 = scalar_lea.vmem %s1804_s28, 128  ;;  %s1614_s11 = smov [#allocation6]  }
  0x54   : > { %p1524_p12 = scmp.ne.s32.totalorder %s1804_s28, %s1523_s30  ;;  %s1528_s17 = sshll.u32 %s1614_s11, 4  ;;  %s1529_s17 = int_to_ptr.vmem [resolvable:$false] %s1528_s17 }
  0x55   : > { %s1530_s7 = scalar_lea.vmem %s1529_s17, 256  ;;  %p1531_p4 = scmp.lt.s32.totalorder %s1804_s28, %s1529_s17 }
  0x56   : > { %p1526_p1 = pnand %p1524_p12, %p1510_p0  ;;  %p1532_p13 = scmp.lt.s32.totalorder %s1530_s7, %s1523_s30 }
  0x58   : > { %p1527_p5 = pneg %p1526_p1  ;;  %p1533_p6 = por %p1532_p13, %p1531_p4 }
  0x5a   : > { %p1534_p10 = pnand %p1533_p6, %p1527_p5 }
  0x5c   : > { %1537 = shalt.err (!%p1534_p10)
}
  0x5d   : > { %1351 = dma.hbm_to_vmem [thread:$0]  (!%p1806_p11), %s1802_s10, 128, %s1804_s28, %s1810_s13, %s1612_s15, %s1612_s15, %s1613_s16  }
  0x5e   : > { %231 = sbr.rel (%p1703_p8) target bundleno = 1578 (0x62a), region = 40  ;;  %s1844_s14 = sand.u32 (!%p1703_p8), 1, %s1600_s19  }
  0x5f   : > { %s1204_s6 = sshll.u32 (!%p1703_p8), %s1844_s14, 3  ;;  %s234_s8 = scalar_lea.sflag (!%p1703_p8), [#allocation7], %s1844_s14 }
  0x60   : > { %s237_s9 = scalar_lea.vmem (!%p1703_p8), [#allocation6], %s1204_s6  ;;  %p2022_p4 = scmp.ne.s32.totalorder (!%p1703_p8), %s2015_s24, 0 }
  0x65   : > { %1583 = dma.done.wait (%p2022_p4), %s234_s8, 128  }
  0x66   : > { %1585 = vsyncadd (%p2022_p4), %s234_s8, 4294967168  ;;  %p2023_p5 = scmp.eq.s32.totalorder %s1684_s22, 0 }
  0x68   : > { %1587 = dma.done.wait (%p2023_p5), [#allocation10], 512   ;;  %p2024_p11 = pmov %p2023_p5 }
  0x69   : > { %v1615_v0 = vmov 0.0   ;;  %vm1616_vm0 = vmmov 0   ;;  %v1415_v1 = vld [vmem:[#allocation9] sm:$0xff]   ;;  %v1416_v2 = vld [vmem:[#allocation9 + $0x8] sm:$0xff]   ;;  %v1417_v3 = vld [vmem:[%s237_s9] sm:$0xff]   ;;  %vm296_vm1 = vcmask 261120  }
  0x6a   : > { %1589 = vsyncadd (%p2024_p11), [#allocation10], 4294966784  ;;  %1265 = vmatprep.subr.bf16.mxu0 %v1615_v0  ;;  %1269 = vmatprep.mubr.msk.bf16.mxu0 %vm1616_vm0, %v1615_v0  ;;  %v1212_v5 = vld [vmem:[%s2008_s2] ss:$0 sm:$0xff]  ;;  %vm351_vm2 = vcmask 64512   ;;  %s1617_s15 = smov 80  }
  0x6b   : > { %1273 = vmatprep.subr.bf16.mxu1 %v1615_v0  ;;  %1275 = vmatprep.mubr.msk.bf16.mxu1 %vm1616_vm0, %v1615_v0  ;;  %s1618_s16 = smov 96   ;;  %s1619_s10 = smov 120   ;;  %vm727_vm3 = vcmask 130048   ;;  %vm1003_vm4 = vcmask 130112   ;;  %vm1010_vm5 = vcmask 195712   ;;  %vm1017_vm6 = vcmask 261312  }
  0x6c   : > { %1266 = vmatpush3.bf16.msra.mxu0 %v1415_v1  ;;  %s1620_s28 = smov 88   ;;  %s1621_s12 = smov 112  }
  0x6d   : > { %1267 = vmatprep.subr.bf16.mxu0 %v1615_v0  ;;  %s1622_s13 = smov 72   ;;  %s1623_s30 = smov 104  }
  0x6e   : > { %s1624_s11 = smov 56   ;;  %s1625_s17 = smov 64  }
  0x6f   : > { %s1626_s7 = smov 48   ;;  %s1627_s6 = smov 40  }
  0x70   : > { %1268 = vmatpush3.bf16.msra.mxu0 %v1416_v2  ;;  %s1628_s8 = smov 8   ;;  %s1629_s9 = smov 16  }
  0x71   : > { %1279 = vmatprep.subr.bf16.mxu0 %v1615_v0  ;;  %s1630_s24 = smov 24   ;;  %s1207_s26 = sshll.u32 %s1844_s14, 4 }
  0x72   : > { %p2025_p0 = scmp.ne.s32.totalorder %s2020_s23, 0 }
  0x73   : > { %1270 = vmatmul.mubr.msk.bf16.vlgmr.msra.gmra.mrb[0].mxu0 %vm296_vm1, %v1417_v3 }
  0x74   : > { %1281 = vmatprep.mubr.msk.bf16.mxu0 %vm1616_vm0, %v1615_v0 }
 0x146   : > { %v334_v4 = vpop.f32.mrb[0].mxu0 }
 0x147   : > { %v1271_v6 = vpop.f32.mrb[1].mxu0  ;;  %v348_v8 = vadd.f32 %v1212_v5, %v334_v4 }
 0x148   : > { %v337_v7 = vpop.f32.mrb[2].mxu0 }
 0x149   : > { %v349_v9 = vadd.f32 %v1212_v5, %v337_v7  ;;  %v1272_v10 = vpop.f32.mrb[3].mxu0 }
 0x14b   : > { %v1870_v11 = vpack.c.bf16 %v349_v9, %v348_v8 }
 0x14d   : > { %458 = vrot.lane.b32.xlu1 %v1870_v11, %s1617_s15  ;;  %364 = vrot.lane.b32.xlu0 %v1870_v11, %s1618_s16  ;;  %352 = vst.msk [vmem:[#allocation2] sm:$0xff] %vm351_vm2, %v1870_v11 }
 0x151   : > { %394 = vrot.lane.b32.xlu1 %v1870_v11, %s1619_s10  ;;  %410 = vrot.lane.b32.xlu0 %v1870_v11, %s1620_s28  ;;  %s271_s10 = scalar_lea.vmem [#allocation12], %s1207_s26 }
 0x152   : > { %s1103_s28 = sshll.u32 %s271_s10, 4  ;;  %s1954_s28 = int_to_ptr.vmem [resolvable:$true] %s1103_s28 }
 0x154   : > { %v527_v24 = vld [vmem:[#allocation2] sm:$0xff] }
 0x155   : > { %442 = vrot.lane.b32.xlu1 %v1870_v11, %s1621_s12  ;;  %506 = vrot.lane.b32.xlu0 %v1870_v11, %s1622_s13  ;;  %s1242_s12 = sshll.u32 %s1684_s22, 8  ;;  %s1090_s22 = scalar_lea.sflag [#allocation8], %s1844_s14 }
 0x159   : > { %490 = vrot.lane.b32.xlu0 %v1870_v11, %s1623_s30 }
 0x1bf   : > { %v459_v12 = vpop.permute.xlu1 %458  ;;  %v365_v13 = vpop.permute.xlu0 %364 }
 0x1c0   : > { %462 = vst.msk [vmem:[#allocation3 + $0x10] sm:$0xff] %vm351_vm2, %v459_v12  ;;  %367 = vst.msk [vmem:[#allocation3] sm:$0xff] %vm351_vm2, %v365_v13 }
 0x1c3   : > { %v395_v14 = vpop.permute.xlu1 %394  ;;  %v411_v15 = vpop.permute.xlu0 %410 }
 0x1c4   : > { %398 = vst.msk [vmem:[#allocation2 + $0x8] sm:$0xff] %vm351_vm2, %v395_v14  ;;  %414 = vst.msk [vmem:[#allocation3 + $0x8] sm:$0xff] %vm351_vm2, %v411_v15 }
 0x1c7   : > { %v443_v16 = vpop.permute.xlu1 %442  ;;  %v507_v17 = vpop.permute.xlu0 %506  ;;  %v531_v18 = vld [vmem:[#allocation3] sm:$0xff]  ;;  %v533_v23 = vld [vmem:[#allocation3 + $0x10] sm:$0xff] }
 0x1c8   : > { %446 = vst.msk [vmem:[#allocation2 + $0x10] sm:$0xff] %vm351_vm2, %v443_v16  ;;  %510 = vst.msk [vmem:[#allocation3 + $0x18] sm:$0xff] %vm351_vm2, %v507_v17  ;;  %v543_v19 = vsel %vm351_vm2, %v531_v18, 0  ;;  %v637_v25 = vsel %vm351_vm2, %v533_v23, 0 }
 0x1c9   : > { %1274 = vmatpush3.bf16.xpose.msra.mxu1 %v543_v19 }
 0x1ca   : > { %1285 = vmatprep.subr.bf16.mxu1 %v1615_v0 }
 0x1cb   : > { %v491_v20 = vpop.permute.xlu0 %490  ;;  %v532_v21 = vld [vmem:[#allocation3 + $0x8] sm:$0xff] }
 0x1cc   : > { %494 = vst.msk [vmem:[#allocation2 + $0x18] sm:$0xff] %vm351_vm2, %v491_v20  ;;  %v590_v22 = vsel %vm351_vm2, %v532_v21, 0  ;;  %v528_v27 = vld [vmem:[#allocation2 + $0x8] sm:$0xff] }
 0x1cd   : > { %1280 = vmatpush3.bf16.xpose.msra.mxu0 %v590_v22 }
 0x1ce   : > { %1291 = vmatprep.subr.bf16.mxu0 %v1615_v0 }
 0x1cf   : > { %v534_v26 = vld [vmem:[#allocation3 + $0x18] sm:$0xff]  ;;  %v529_v29 = vld [vmem:[#allocation2 + $0x10] sm:$0xff] }
 0x1d0   : > { %1276 = vmatmul.mubr.msk.bf16.vlgmr.msra.gmra.mrb[0].mxu1 %vm351_vm2, %v527_v24  ;;  %v684_v28 = vsel %vm351_vm2, %v534_v26, 0 }
 0x1d1   : > { %1286 = vmatpush3.bf16.xpose.msra.mxu1 %v637_v25  ;;  %1287 = vmatprep.mubr.msk.bf16.mxu1 %vm1616_vm0, %v1615_v0 }
 0x1d2   : > { %1297 = vmatprep.subr.bf16.mxu1 %v1615_v0 }
 0x1d3   : > { %v530_v30 = vld [vmem:[#allocation2 + $0x18] sm:$0xff] }
 0x1d4   : > { %1282 = vmatmul.mubr.msk.bf16.vlgmr.msra.gmra.mrb[4].mxu0 %vm351_vm2, %v528_v27 }
 0x1d5   : > { %1292 = vmatpush3.bf16.xpose.msra.mxu0 %v684_v28  ;;  %1293 = vmatprep.mubr.msk.bf16.mxu0 %vm1616_vm0, %v1615_v0 }
 0x1d6   : > { %1303 = vmatprep.subr.bf16.mxu0 %v1615_v0 }
 0x1d8   : > { %1288 = vmatmul.mubr.msk.bf16.vlgmr.msra.gmra.mrb[4].mxu1 %vm351_vm2, %v529_v29 }
 0x1d9   : > { %1299 = vmatprep.mubr.msk.bf16.mxu1 %vm1616_vm0, %v1615_v0 }
 0x1dc   : > { %1294 = vmatmul.mubr.msk.bf16.vlgmr.msra.gmra.mrb[8].mxu0 %vm351_vm2, %v530_v30 }
 0x1dd   : > { %1305 = vmatprep.mubr.msk.bf16.mxu0 %vm1616_vm0, %v1615_v0 }
 0x2a3   : > { %v579_v31 = vpop.f32.mrb[0].mxu1 }
 0x2a4   : > { %v1277_v32 = vpop.f32.mrb[1].mxu1  ;;  %v728_v33 = vsel %vm727_vm3, %v579_v31, -inf }
 0x2a5   : > { %729 = vmax.xlane.f32.xlu1 %v728_v33  ;;  %v582_v34 = vpop.f32.mrb[2].mxu1 }
 0x2a6   : > { %v1278_v35 = vpop.f32.mrb[3].mxu1  ;;  %v731_v36 = vsel %vm727_vm3, %v582_v34, -inf }
 0x2a7   : > { %732 = vmax.xlane.f32.xlu0 %v731_v36  ;;  %v626_v37 = vpop.f32.mrb[4].mxu0 }
 0x2a8   : > { %v1283_v38 = vpop.f32.mrb[5].mxu0  ;;  %v734_v41 = vsel %vm727_vm3, %v626_v37, -inf }
 0x2a9   : > { %v629_v39 = vpop.f32.mrb[6].mxu0 }
 0x2aa   : > { %v1284_v40 = vpop.f32.mrb[7].mxu0  ;;  %v737_v42 = vsel %vm727_vm3, %v629_v39, -inf }
 0x2ab   : > { %v673_v43 = vpop.f32.mrb[4].mxu1  ;;  %735 = vmax.xlane.f32.xlu0 %v734_v41  ;;  %738 = vmax.xlane.f32.xlu1 %v737_v42 }
 0x2ac   : > { %v1289_v44 = vpop.f32.mrb[5].mxu1  ;;  %v740_v47 = vsel %vm727_vm3, %v673_v43, -inf }
 0x2ad   : > { %v676_v45 = vpop.f32.mrb[6].mxu1 }
 0x2ae   : > { %v1290_v46 = vpop.f32.mrb[7].mxu1  ;;  %v743_v48 = vsel %vm727_vm3, %v676_v45, -inf }
 0x2af   : > { %741 = vmax.xlane.f32.xlu0 %v740_v47  ;;  %744 = vmax.xlane.f32.xlu1 %v743_v48  ;;  %v720_v49 = vpop.f32.mrb[8].mxu0 }
 0x2b0   : > { %v1295_v50 = vpop.f32.mrb[9].mxu0  ;;  %v746_v53 = vsel %vm727_vm3, %v720_v49, -inf }
 0x2b1   : > { %v723_v51 = vpop.f32.mrb[10].mxu0 }
 0x2b2   : > { %v1296_v52 = vpop.f32.mrb[11].mxu0  ;;  %v749_v54 = vsel %vm727_vm3, %v723_v51, -inf }
 0x2b3   : > { %747 = vmax.xlane.f32.xlu0 %v746_v53  ;;  %750 = vmax.xlane.f32.xlu1 %v749_v54 }
 0x2c4   : > { %426 = vrot.lane.b32.xlu1 %v1870_v11, %s1624_s11  ;;  %s1960_s11 = scalar_lea.hbm %s2011_s5, %s1242_s12 }
 0x2c9   : > { %379 = vrot.lane.b32.xlu0 %v1870_v11, %s1625_s17  ;;  %s1538_s17 = scalar_lea.vmem %s1954_s28, 256 }
 0x2ca   : > { %p1539_p8 = scmp.ne.s32.totalorder %s1954_s28, %s1538_s17 }
 0x2cc   : > { %p1540_p2 = pnand %p1539_p8, %p2025_p0 }
 0x2ce   : > { %p1541_p3 = pneg %p1540_p2 }
 0x332   : > { %v730_v55 = vpop.xlane.xlu1 %729 }
 0x333   : > { %v752_v56 = vsub.f32 %v579_v31, %v730_v55 }
 0x334   : > { %v733_v57 = vpop.xlane.xlu0 %732 }
 0x335   : > { %v760_v58 = vmul.f32 1.442695, %v752_v56  ;;  %v753_v59 = vsub.f32 %v582_v34, %v733_v57 }
 0x337   : > { %1420 = vpow2.f32 %v760_v58  ;;  %v762_v60 = vmul.f32 1.442695, %v753_v59 }
 0x338   : > { %v736_v61 = vpop.xlane.xlu0 %735  ;;  %v739_v62 = vpop.xlane.xlu1 %738 }
 0x339   : > { %1422 = vpow2.f32 %v762_v60  ;;  %v754_v63 = vsub.f32 %v626_v37, %v736_v61  ;;  %v755_v1 = vsub.f32 %v629_v39, %v739_v62 }
 0x33b   : > { %v764_v2 = vmul.f32 1.442695, %v754_v63  ;;  %v766_v3 = vmul.f32 1.442695, %v755_v1 }
 0x33c   : > { %v742_v4 = vpop.xlane.xlu0 %741  ;;  %v745_v5 = vpop.xlane.xlu1 %744 }
 0x33d   : > { %1424 = vpow2.f32 %v764_v2  ;;  %v756_v6 = vsub.f32 %v673_v43, %v742_v4  ;;  %v757_v7 = vsub.f32 %v676_v45, %v745_v5 }
 0x33e   : > { %1426 = vpow2.f32 %v766_v3 }
 0x33f   : > { %v768_v8 = vmul.f32 1.442695, %v756_v6  ;;  %v770_v9 = vmul.f32 1.442695, %v757_v7 }
 0x340   : > { %v748_v10 = vpop.xlane.xlu0 %747  ;;  %v751_v12 = vpop.xlane.xlu1 %750 }
 0x341   : > { %v1421_v13 = vpop.eup %1420  ;;  %1428 = vpow2.f32 %v768_v8  ;;  %v758_v14 = vsub.f32 %v720_v49, %v748_v10  ;;  %v759_v15 = vsub.f32 %v723_v51, %v751_v12  ;;  %v1418_v12 = vld [vmem:[#allocation11] sm:$0xff]  }
 0x342   : > { %1430 = vpow2.f32 %v770_v9  ;;  %v776_v16 = vsel %vm727_vm3, %v1421_v13, 0.0 }
 0x343   : > { %v1423_v17 = vpop.eup %1422  ;;  %v772_v18 = vmul.f32 1.442695, %v758_v14  ;;  %v774_v19 = vmul.f32 1.442695, %v759_v15  ;;  %777 = vadd.xlane.f32.xlu0 %v776_v16  ;;  %v1419_v15 = vld [vmem:[#allocation11 + $0x8] sm:$0xff]  }
 0x344   : > { %v380_v20 = vpop.permute.xlu0 %379  ;;  %v427_v21 = vpop.permute.xlu1 %426  ;;  %v779_v22 = vsel %vm727_vm3, %v1423_v17, 0.0 }
 0x345   : > { %1432 = vpow2.f32 %v772_v18  ;;  %382 = vst.msk [vmem:[#allocation4] sm:$0xff] %vm351_vm2, %v380_v20  ;;  %430 = vst.msk [vmem:[#allocation4 + $0x8] sm:$0xff] %vm351_vm2, %v427_v21  ;;  %780 = vadd.xlane.f32.xlu1 %v779_v22 }
 0x346   : > { %1434 = vpow2.f32 %v774_v19 }
 0x347   : > { %v1425_v23 = vpop.eup %1424 }
 0x348   : > { %v1427_v24 = vpop.eup %1426  ;;  %v782_v25 = vsel %vm727_vm3, %v1425_v23, 0.0 }
 0x349   : > { %783 = vadd.xlane.f32.xlu0 %v782_v25  ;;  %v785_v26 = vsel %vm727_vm3, %v1427_v24, 0.0 }
 0x34a   : > { %786 = vadd.xlane.f32.xlu1 %v785_v26 }
 0x34b   : > { %v1429_v27 = vpop.eup %1428 }
 0x34c   : > { %v1431_v28 = vpop.eup %1430  ;;  %v788_v29 = vsel %vm727_vm3, %v1429_v27, 0.0  ;;  %v535_v30 = vld [vmem:[#allocation4] sm:$0xff]  ;;  %v536_v31 = vld [vmem:[#allocation4 + $0x8] sm:$0xff] }
 0x34d   : > { %789 = vadd.xlane.f32.xlu0 %v788_v29  ;;  %1298 = vmatpush3.bf16.msra.mxu1 %v535_v30  ;;  %v791_v32 = vsel %vm727_vm3, %v1431_v28, 0.0 }
 0x34e   : > { %792 = vadd.xlane.f32.xlu1 %v791_v32  ;;  %1304 = vmatpush3.bf16.msra.mxu0 %v536_v31  ;;  %v1232_v31 = vld [vmem:[%s2010_s4] ss:$0 sm:$0xff] }
 0x34f   : > { %v1433_v33 = vpop.eup %1432  ;;  %1309 = vmatprep.subr.bf16.mxu1 %v1615_v0  ;;  %1315 = vmatprep.subr.bf16.mxu0 %v1615_v0 }
 0x350   : > { %v1435_v34 = vpop.eup %1434  ;;  %v794_v35 = vsel %vm727_vm3, %v1433_v33, 0.0 }
 0x351   : > { %795 = vadd.xlane.f32.xlu0 %v794_v35  ;;  %v797_v36 = vsel %vm727_vm3, %v1435_v34, 0.0 }
 0x352   : > { %798 = vadd.xlane.f32.xlu1 %v797_v36 }
 0x363   : > { %474 = vrot.lane.b32.xlu1 %v1870_v11, %s1626_s7  ;;  %s1631_s7 = smov [#allocation12]  }
 0x367   : > { %522 = vrot.lane.b32.xlu0 %v1870_v11, %s1627_s6  ;;  %s1542_s6 = sshll.u32 %s1631_s7, 4  ;;  %s1543_s6 = int_to_ptr.vmem [resolvable:$false] %s1542_s6 }
 0x368   : > { %p1545_p7 = scmp.lt.s32.totalorder %s1954_s28, %s1543_s6 }
 0x3d0   : > { %v778_v37 = vpop.xlane.xlu0 %777 }
 0x3d1   : > { %1436 = vrcp.f32 %v778_v37 }
 0x3d2   : > { %v781_v38 = vpop.xlane.xlu1 %780 }
 0x3d3   : > { %1438 = vrcp.f32 %v781_v38 }
 0x3d6   : > { %v784_v39 = vpop.xlane.xlu0 %783 }
 0x3d7   : > { %1440 = vrcp.f32 %v784_v39  ;;  %v787_v40 = vpop.xlane.xlu1 %786 }
 0x3d8   : > { %1442 = vrcp.f32 %v787_v40 }
 0x3da   : > { %v790_v41 = vpop.xlane.xlu0 %789 }
 0x3db   : > { %v1437_v42 = vpop.eup %1436  ;;  %1444 = vrcp.f32 %v790_v41  ;;  %v793_v43 = vpop.xlane.xlu1 %792 }
 0x3dc   : > { %1446 = vrcp.f32 %v793_v43  ;;  %v808_v45 = vmul.f32 %v1437_v42, %v1421_v13 }
 0x3dd   : > { %v1439_v44 = vpop.eup %1438 }
 0x3de   : > { %v809_v46 = vmul.f32 %v1439_v44, %v1423_v17  ;;  %v796_v47 = vpop.xlane.xlu0 %795 }
 0x3df   : > { %1448 = vrcp.f32 %v796_v47  ;;  %v799_v48 = vpop.xlane.xlu1 %798 }
 0x3e0   : > { %1450 = vrcp.f32 %v799_v48  ;;  %v816_v11 = vpack.c.bf16 %v809_v46, %v808_v45 }
 0x3e1   : > { %v1441_v49 = vpop.eup %1440 }
 0x3e2   : > { %v1443_v50 = vpop.eup %1442  ;;  %v810_v51 = vmul.f32 %v1441_v49, %v1425_v23  ;;  %v523_v52 = vpop.permute.xlu0 %522  ;;  %1300 = vmatmul.mubr.msk.bf16.vlgmr.msra.gmra.mrb[8].mxu1 %vm727_vm3, %v816_v11 }
 0x3e3   : > { %v811_v53 = vmul.f32 %v1443_v50, %v1427_v24  ;;  %526 = vst.msk [vmem:[#allocation4 + $0x18] sm:$0xff] %vm351_vm2, %v523_v52  ;;  %v475_v54 = vpop.permute.xlu1 %474  ;;  %1311 = vmatprep.mubr.msk.bf16.mxu1 %vm1616_vm0, %v1615_v0 }
 0x3e4   : > { %478 = vst.msk [vmem:[#allocation4 + $0x10] sm:$0xff] %vm351_vm2, %v475_v54 }
 0x3e5   : > { %v1445_v55 = vpop.eup %1444  ;;  %v817_v56 = vpack.c.bf16 %v811_v53, %v810_v51 }
 0x3e6   : > { %v1447_v57 = vpop.eup %1446  ;;  %v812_v59 = vmul.f32 %v1445_v55, %v1429_v27 }
 0x3e7   : > { %1306 = vmatmul.mubr.msk.bf16.vlgmr.msra.gmra.mrb[12].mxu0 %vm727_vm3, %v817_v56  ;;  %v813_v60 = vmul.f32 %v1447_v57, %v1431_v28 }
 0x3e8   : > { %1317 = vmatprep.mubr.msk.bf16.mxu0 %vm1616_vm0, %v1615_v0 }
 0x3e9   : > { %v1449_v58 = vpop.eup %1448  ;;  %v818_v3 = vpack.c.bf16 %v813_v60, %v812_v59 }
 0x3ea   : > { %v1451_v61 = vpop.eup %1450  ;;  %v814_v62 = vmul.f32 %v1449_v58, %v1433_v33  ;;  %v538_v63 = vld [vmem:[#allocation4 + $0x18] sm:$0xff] }
 0x3eb   : > { %v815_v1 = vmul.f32 %v1451_v61, %v1435_v34  ;;  %v537_v2 = vld [vmem:[#allocation4 + $0x10] sm:$0xff]  ;;  %1316 = vmatpush3.bf16.msra.mxu0 %v538_v63 }
 0x3ec   : > { %1310 = vmatpush3.bf16.msra.mxu1 %v537_v2 }
 0x3ed   : > { %v819_v4 = vpack.c.bf16 %v815_v1, %v814_v62  ;;  %1321 = vmatprep.subr.bf16.mxu1 %v1615_v0 }
 0x3ef   : > { %1312 = vmatmul.mubr.msk.bf16.vlgmr.msra.gmra.mrb[12].mxu1 %vm727_vm3, %v818_v3  ;;  %1318 = vmatmul.mubr.msk.bf16.vlgmr.msra.gmra.mrb[16].mxu0 %vm727_vm3, %v819_v4 }
 0x3f0   : > { %1325 = vmatprep.mubr.msk.bf16.mxu1 %vm1616_vm0, %v1615_v0  ;;  %1322 = vmatpush3.bf16.msra.mxu1 %v1418_v12 }
 0x3f1   : > { %1323 = vmatprep.subr.bf16.mxu1 %v1615_v0 }
 0x3f4   : > { %1324 = vmatpush3.bf16.msra.mxu1 %v1419_v15 }
 0x4b5   : > { %v857_v5 = vpop.f32.mrb[8].mxu1 }
 0x4b6   : > { %v1301_v6 = vpop.f32.mrb[9].mxu1 }
 0x4b7   : > { %v860_v7 = vpop.f32.mrb[10].mxu1 }
 0x4b8   : > { %v996_v8 = vpack.c.bf16 %v860_v7, %v857_v5  ;;  %v1302_v9 = vpop.f32.mrb[11].mxu1 }
 0x4ba   : > { %997 = vst.msk [vmem:[#allocation5] sm:$0xff] %vm351_vm2, %v996_v8  ;;  %v901_v10 = vpop.f32.mrb[12].mxu0 }
 0x4bb   : > { %v1307_v13 = vpop.f32.mrb[13].mxu0 }
 0x4bc   : > { %v904_v14 = vpop.f32.mrb[14].mxu0 }
 0x4bd   : > { %v998_v16 = vpack.c.bf16 %v904_v14, %v901_v10  ;;  %v1308_v17 = vpop.f32.mrb[15].mxu0 }
 0x4bf   : > { %1000 = vrot.lane.b32.xlu1 %v998_v16, %s1628_s8 }
 0x4c2   : > { %v945_v18 = vpop.f32.mrb[12].mxu1  ;;  %v989_v19 = vpop.f32.mrb[16].mxu0 }
 0x4c3   : > { %v1313_v20 = vpop.f32.mrb[13].mxu1  ;;  %v1319_v21 = vpop.f32.mrb[17].mxu0 }
 0x4c4   : > { %v948_v22 = vpop.f32.mrb[14].mxu1  ;;  %v992_v23 = vpop.f32.mrb[18].mxu0 }
 0x4c5   : > { %v1005_v24 = vpack.c.bf16 %v948_v22, %v945_v18  ;;  %v1012_v25 = vpack.c.bf16 %v992_v23, %v989_v19  ;;  %v1314_v26 = vpop.f32.mrb[15].mxu1  ;;  %v1320_v27 = vpop.f32.mrb[19].mxu0 }
 0x4c7   : > { %1007 = vrot.lane.b32.xlu0 %v1005_v24, %s1629_s9  ;;  %1014 = vrot.lane.b32.xlu1 %v1012_v25, %s1630_s24  ;;  %s1544_s9 = scalar_lea.vmem %s1543_s6, 512 }
 0x4c8   : > { %p1546_p9 = scmp.lt.s32.totalorder %s1544_s9, %s1538_s17 }
 0x4ca   : > { %p1547_p12 = por %p1546_p9, %p1545_p7 }
 0x4cc   : > { %p1548_p1 = pnand %p1547_p12, %p1541_p3 }
 0x531   : > { %v1001_v0 = vpop.permute.xlu1 %1000 }
 0x532   : > { %1004 = vst.msk [vmem:[#allocation5] sm:$0xff] %vm1003_vm4, %v1001_v0 }
 0x539   : > { %v1008_v28 = vpop.permute.xlu0 %1007  ;;  %v1015_v29 = vpop.permute.xlu1 %1014 }
 0x53a   : > { %1011 = vst.msk [vmem:[#allocation5] sm:$0xff] %vm1010_vm5, %v1008_v28 }
 0x53b   : > { %1018 = vst.msk [vmem:[#allocation5] sm:$0xff] %vm1017_vm6, %v1015_v29 }
 0x542   : > { %v1019_v30 = vld [vmem:[#allocation5] sm:$0xff] }
 0x543   : > { %1326 = vmatmul.mubr.msk.bf16.vlgmr.msra.gmra.mrb[16].mxu1 %vm296_vm1, %v1019_v30 }
 0x616   : > { %v1080_v32 = vpop.f32.mrb[16].mxu1 }
 0x617   : > { %v1081_v33 = vadd.f32 %v1232_v31, %v1080_v32  ;;  %v1327_v34 = vpop.f32.mrb[17].mxu1 }
 0x618   : > { %v1083_v35 = vpop.f32.mrb[18].mxu1 }
 0x619   : > { %1087 = vst.msk [vmem:[%s271_s10] sm:$0xff] %vm296_vm1, %v1081_v33  ;;  %v1084_v36 = vadd.f32 %v1232_v31, %v1083_v35  ;;  %v1328_v37 = vpop.f32.mrb[19].mxu1 }
 0x61b   : > { %1088 = vst.msk [vmem:[%s271_s10 + $0x8] sm:$0xff] %vm296_vm1, %v1084_v36 }
 0x61c   : > { %1551 = shalt.err (!%p1548_p1)
}
 0x61d   : > { %s1552_s24 = scalar_lea.hbm %s1960_s11, 256  ;;  %s1556_s16 = scalar_lea.hbm %s2011_s5, 512 }
 0x61e   : > { %p1553_p13 = scmp.ne.s32.totalorder %s1960_s11, %s1552_s24  ;;  %p1557_p4 = scmp.lt.u32.totalorder %s1960_s11, %s2011_s5 }
 0x61f   : > { %p1558_p5 = scmp.lt.u32.totalorder %s1556_s16, %s1552_s24  ;;  %p1560_p8 = scmp.lt.u32.totalorder %s1552_s24, %s1960_s11 }
 0x620   : > { %p1554_p6 = pnand %p1553_p13, %p2025_p0 }
 0x621   : > { %p1559_p11 = por %p1558_p5, %p1557_p4 }
 0x622   : > { %p1555_p10 = pneg %p1554_p6 }
 0x623   : > { %p1561_p2 = por %p1560_p8, %p1559_p11 }
 0x625   : > { %p1562_p3 = pnand %p1561_p2, %p1555_p10 }
 0x627   : > { %1565 = shalt.err (!%p1562_p3)
}
 0x628   : > { %s1632_s13 = smov 128  }
 0x629   : > { %1339 = dma.vmem_to_hbm [thread:$0]  (%p2025_p0), %s1954_s28, 256, %s1960_s11, %s1090_s22, %s1632_s13, %s1632_s13, %s1628_s8  }
 0x62a PF: > { %s1118_s30 = sand.u32 1, %s1596_s18   ;;  %p2026_p7 = scmp.ne.s32.totalorder %s2016_s25, 0 }
 0x62b   : > { %p2027_p9 = scmp.ge.s32.totalorder %s1608_s21, 2  ;;  %s1119_s17 = scalar_lea.sflag [#allocation8], %s1118_s30 }
 0x62d   : > { %p1353_p12 = pnand %p2027_p9, %p2026_p7 }
 0x62f   : > { %1591 = dma.done.wait (!%p1353_p12), %s1119_s17, 256  }
 0x630   : > { %1593 = vsyncadd (!%p1353_p12), %s1119_s17, 4294967040  ;;  %p19_p1 = scmp.ge.s32.totalorder %s1779_s29, 4   ;;  %s2028_s18 = smov %s1600_s19 }
 0x631   : > { %s2029_s19 = smov %s1604_s20  ;;  %s2030_s20 = smov %s1795_s27 }
 0x632   : > { %s2031_s21 = smov %s1779_s29  ;;  %21 = sbr.rel (!%p19_p1) target bundleno = 6 (0x6), region = 102 }
 0x639   :  { %1124 = vsyncpa [#allocation7], 1 }
 0x63a   :  { %1126 = vsyncpa [#allocation7 + $0x1], 1 }
 0x63b   :  { %1127 = vsyncpa [#allocation10], 1 }
 0x63c   :  { %1128 = vsyncpa [#allocation8], 1 }
 0x63d   :  { %1130 = vsyncpa [#allocation8 + $0x1], 1 }

</bundles_post_ra>
